<compile_context>
chip_gen: v5e
topology: v5e:2x2
jax: 0.10.0
libtpu: 0.0.40
codegen_flags: <defaults>
</compile_context>

<pallas_src>
import jax
import jax.numpy as jnp
from jax.experimental import pallas as pl
from jax.experimental.pallas import tpu as pltpu


def _seg_loss_kernel(w_ref, yp_ref, y_ref, out_ref, bce_acc, inter_acc, ab_acc):
    s = pl.program_id(1)
    n_s = pl.num_programs(1)

    @pl.when(s == 0)
    def _():
        bce_acc[...] = jnp.zeros_like(bce_acc)
        inter_acc[...] = jnp.zeros_like(inter_acc)
        ab_acc[...] = jnp.zeros_like(ab_acc)

    x = yp_ref[...].astype(jnp.float32)    # (C, rt, 128) logits
    t = y_ref[...].astype(jnp.float32)     # (C, rt, 128) targets

    # --- BCEWithLogitsLoss (numerically stable): max(x,0) - x*t + log1p(e^-|x|)
    bce = jnp.maximum(x, 0.0) - x * t + jnp.log1p(jnp.exp(-jnp.abs(x)))

    # --- Jaccard pieces: round(sigmoid(v)) == (v > 0) (half-to-even at 0.5) ---
    a = jnp.where(x > 0.0, 1.0, 0.0)
    b = jnp.where(t > 0.0, 1.0, 0.0)
    inter = a * b          # relu(a + b - 1) for binary a, b
    ab = a + b             # union = ceil((a+b)/2) = a + b - a*b (epilogue)

    c, rt, _ = x.shape
    g = rt // 8
    # Fold onto (8,128) vregs with pure VPU adds: no per-step XLU reduction.
    bce_acc[...] += jnp.sum(bce.reshape(c, g, 8, 128), axis=(0, 1))
    inter_acc[...] += jnp.sum(inter.reshape(c, g, 8, 128), axis=1)
    ab_acc[...] += jnp.sum(ab.reshape(c, g, 8, 128), axis=1)

    @pl.when(s == n_s - 1)
    def _():
        nch = inter_acc.shape[0]
        inter_c = jnp.sum(inter_acc[...].reshape(nch, 8 * 128), axis=1,
                          keepdims=True)                       # (C, 1)
        ab_c = jnp.sum(ab_acc[...].reshape(nch, 8 * 128), axis=1,
                       keepdims=True)                          # (C, 1)
        union_c = ab_c - inter_c
        # TODO(synk): union_c == 0 (class empty in pred and target) gives
        # NaN/Inf exactly like the PyTorch reference; no guard on purpose.
        jacc = jnp.sum(w_ref[...] * inter_c / union_c)
        bce_sum = jnp.sum(bce_acc[...])
        row = jax.lax.broadcasted_iota(jnp.int32, (2, 128), 0)
        out_ref[...] = jnp.where(row == 0, bce_sum, jacc)


def _vmem_capacity_bytes():
    try:
        return int(pltpu.get_tpu_info().vmem_capacity_bytes)
    except Exception:
        return 64 * 1024 * 1024      # conservative (v7x-sized) fallback


def _pick_row_tile(n_rows, n_ch, in_bytes, tile_budget):
    """Pick (rt, rows_padded). `n_rows` is the number of 128-wide rows per
    channel and is already a multiple of 8. Accounts for double-buffered
    inputs (2 inputs x 2 buffers) plus ~6 tile-sized f32 temporaries."""
    bytes_per_row = n_ch * 128 * (2 * in_bytes + 6 * 4)
    max_rt = max(8, (tile_budget // bytes_per_row) // 8 * 8)
    if n_rows <= max_rt:
        return n_rows, n_rows
    # Prefer a multiple-of-8 divisor of n_rows (no extra padding needed).
    m, e_max, best_e, d = n_rows // 8, max_rt // 8, 0, 1
    while d * d <= m:
        if m % d == 0:
            for cand in (d, m // d):
                if cand <= e_max:
                    best_e = max(best_e, cand)
        d += 1
    rt_div = 8 * best_e
    if rt_div >= max(8, max_rt // 4):
        return rt_div, n_rows
    # Otherwise pad the row count so budget-sized tiles divide it evenly
    # (never fall back to the full spatial extent -> VMEM-safe on v7x).
    rt = max_rt
    return rt, ((n_rows + rt - 1) // rt) * rt


def seg_loss(y_pred, y, c_weights=None, assume_binary_targets=False):
    """Pallas implementation of SegLoss.forward(y_pred, y)."""
    B, C, H, W = y_pred.shape
    hw = H * W
    n_elem = B * C * hw

    if c_weights is None:
        w = jax.nn.softmax(jnp.ones((C,), jnp.float32))
    else:
        w = jnp.asarray(c_weights, jnp.float32)
        if w.shape[0] != C:
            raise ValueError("number of weights must equal number of classes")
        # TODO(synk): torch re-softmaxes when sum != 1 (that torch path is
        # itself broken: softmax without dim); weights assumed pre-normalized.
    w_col = w.reshape(C, 1)

    yp = y_pred.reshape(B, C, hw)
    yt = y.reshape(B, C, hw)
    if assume_binary_targets:
        # Hard {0,1} labels are exact in bf16 -> ~25-33% less HBM traffic.
        # Not applied by default because BCEWithLogits accepts soft targets.
        yt = yt.astype(jnp.bfloat16)

    vmem_cap = _vmem_capacity_bytes()
    vmem_limit = min((vmem_cap * 3) // 4, 96 * 1024 * 1024)
    tile_budget = min(vmem_cap // 4, 24 * 1024 * 1024)

    in_bytes = jnp.dtype(yp.dtype).itemsize + jnp.dtype(yt.dtype).itemsize
    rows0 = pl.cdiv(hw, 8 * 128) * 8                 # rows of 128, multiple of 8
    rt, rows = _pick_row_tile(rows0, C, in_bytes, tile_budget)
    hw_pad = rows * 128
    n_s = rows // rt
    assert rows % rt == 0 and rt % 8 == 0

    if hw_pad != hw:
        # Padding contributes exactly 0 to BCE, intersection and union:
        # exp(-1000) underflows to 0 in f32 and (x>0) == (t>0) == 0 on the pad.
        pad = hw_pad - hw
        yp = jnp.pad(yp, ((0, 0), (0, 0), (0, pad)), constant_values=-1000.0)
        yt = jnp.pad(yt, ((0, 0), (0, 0), (0, pad)), constant_values=0.0)
    yp = yp.reshape(B, C, rows, 128)
    yt = yt.reshape(B, C, rows, 128)

    cost = pl.CostEstimate(
        flops=int(14 * B * C * hw_pad),
        transcendentals=int(2 * B * C * hw_pad),
        bytes_accessed=int(B * C * hw_pad * in_bytes + B * 2 * 128 * 4 + C * 4),
    )

    partials = pl.pallas_call(
        _seg_loss_kernel,
        out_shape=jax.ShapeDtypeStruct((B, 2, 128), jnp.float32),
        grid_spec=pltpu.PrefetchScalarGridSpec(
            num_scalar_prefetch=0,
            grid=(B, n_s),
            in_specs=[
                pl.BlockSpec((C, 1), lambda b, s: (0, 0)),
                pl.BlockSpec((None, C, rt, 128), lambda b, s: (b, 0, s, 0)),
                pl.BlockSpec((None, C, rt, 128), lambda b, s: (b, 0, s, 0)),
            ],
            out_specs=pl.BlockSpec((None, 2, 128), lambda b, s: (b, 0, 0)),
            scratch_shapes=[
                pltpu.VMEM((8, 128), jnp.float32),      # BCE partial sums
                pltpu.VMEM((C, 8, 128), jnp.float32),   # per-channel intersection
                pltpu.VMEM((C, 8, 128), jnp.float32),   # per-channel a + b
            ],
        ),
        compiler_params=pltpu.CompilerParams(
            dimension_semantics=("parallel", "arbitrary"),
            vmem_limit_bytes=int(vmem_limit),
        ),
        cost_estimate=cost,
    )(w_col, yp, yt)

    bce_mean = jnp.sum(partials[:, 0, 0]) / float(n_elem)
    jacc = partials[:, 1, 0]                           # (B,) weighted Jaccard
    dice_val = jnp.mean(2.0 * jacc / (1.0 + jacc))
    # TODO(synk): on v7x with B == 1 one TensorCore idles; a 2-way spatial
    # split on an extra parallel grid axis would recover it.
    return bce_mean + 1.0 - dice_val


def seg_loss_ref(y_pred, y, c_weights=None):
    """Pure-JAX reference matching the PyTorch semantics."""
    B, C, H, W = y_pred.shape
    x = y_pred.astype(jnp.float32)
    t = y.astype(jnp.float32)
    w = (jax.nn.softmax(jnp.ones((C,), jnp.float32))
         if c_weights is None else jnp.asarray(c_weights, jnp.float32))
    bce = jnp.mean(jnp.maximum(x, 0.0) - x * t
                   + jnp.log1p(jnp.exp(-jnp.abs(x))))
    a = jnp.round(1.0 / (1.0 + jnp.exp(-x)))
    c = jnp.round(1.0 / (1.0 + jnp.exp(-t)))
    inter = jnp.sum(jnp.maximum(a + c - 1.0, 0.0), axis=(2, 3))   # (B, C)
    union = jnp.sum(jnp.ceil((a + c) * 0.5), axis=(2, 3))         # (B, C)
    jacc = jnp.sum(w[None, :] * inter / union, axis=1)            # (B,)
    dice_val = jnp.mean(2.0 * jacc / (1.0 + jacc))
    return bce + 1.0 - dice_val


if __name__ == "__main__":
    key = jax.random.PRNGKey(0)
    k1, k2 = jax.random.split(key)
    B, C, H, W = 2, 4, 16, 16
    y_pred = jax.random.normal(k1, (B, C, H, W), dtype=jnp.float32)      # logits
    y = jax.random.bernoulli(k2, 0.5, (B, C, H, W)).astype(jnp.float32)  # binary targets

    loss = seg_loss(y_pred, y)
    jax.block_until_ready(loss)
    ref = seg_loss_ref(y_pred, y)
    assert jnp.allclose(loss, ref, rtol=1e-5, atol=1e-5), (loss, ref)

    # Native-dtype path: bf16 logits are cast to f32 on the VMEM tile.
    yp_bf16 = y_pred.astype(jnp.bfloat16)
    loss_bf16 = seg_loss(yp_bf16, y)
    jax.block_until_ready(loss_bf16)
    ref_bf16 = seg_loss_ref(yp_bf16, y)
    assert jnp.allclose(loss_bf16, ref_bf16, rtol=1e-5, atol=1e-5), (loss_bf16, ref_bf16)

    # Narrow-target path (exact for hard {0,1} labels).
    loss_bin = seg_loss(y_pred, y, assume_binary_targets=True)
    jax.block_until_ready(loss_bin)
    assert jnp.allclose(loss_bin, ref, rtol=1e-5, atol=1e-5), (loss_bin, ref)

    print("KERNEL_OK")
</pallas_src>

<mosaic_0001>
module attributes {stable_mosaic.version = 11 : i64} {
  func.func @_seg_loss_kernel(%arg0: i32, %arg1: i32, %arg2: memref<4x1xf32, #tpu.memory_space<vmem>>, %arg3: memref<1x4x8x128xf32, #tpu.memory_space<vmem>>, %arg4: memref<1x4x8x128xf32, #tpu.memory_space<vmem>>, %arg5: memref<1x2x128xf32, #tpu.memory_space<vmem>>, %arg6: memref<8x128xf32, #tpu.memory_space<vmem>>, %arg7: memref<4x8x128xf32, #tpu.memory_space<vmem>>, %arg8: memref<4x8x128xf32, #tpu.memory_space<vmem>>) attributes {dimension_semantics = [#tpu.dimension_semantics<parallel>, #tpu.dimension_semantics<arbitrary>], iteration_bounds = array<i64: 2, 1>, scalar_prefetch = 0 : i64, scratch_operands = 3 : i64, tpu.core_type = #tpu.core_type<tc>, window_params = [{pipeline_mode = #tpu.pipeline_mode<synchronous>, transform_indices = @transform_0, window_bounds = array<i64: 4, 1>}, {transform_indices = @transform_1, window_bounds = array<i64: 1, 4, 8, 128>}, {transform_indices = @transform_2, window_bounds = array<i64: 1, 4, 8, 128>}, {transform_indices = @transform_3, window_bounds = array<i64: 1, 2, 128>}]} {
    %c0_i32 = arith.constant 0 : i32
    %0 = arith.cmpi eq, %arg1, %c0_i32 : i32
    %1 = arith.extui %0 : i1 to i32
    %c0_i32_0 = arith.constant 0 : i32
    %2 = arith.cmpi ne, %1, %c0_i32_0 : i32
    scf.if %2 {
      %cst_36 = arith.constant 0.000000e+00 : f32
      %47 = vector.broadcast %cst_36 : f32 to vector<8x128xf32>
      %c0_37 = arith.constant 0 : index
      %c0_38 = arith.constant 0 : index
      %48 = vector.load %arg6[%c0_37, %c0_38] : memref<8x128xf32, #tpu.memory_space<vmem>>, vector<8x128xf32>
      tpu.vector_store %arg6[%c0_37, %c0_38], %47 {strides = array<i32>} : memref<8x128xf32, #tpu.memory_space<vmem>>, vector<8x128xf32>,
      %cst_39 = arith.constant 0.000000e+00 : f32
      %49 = vector.broadcast %cst_39 : f32 to vector<4x8x128xf32>
      %c0_40 = arith.constant 0 : index
      %c0_41 = arith.constant 0 : index
      %c0_42 = arith.constant 0 : index
      %50 = vector.load %arg7[%c0_40, %c0_41, %c0_42] : memref<4x8x128xf32, #tpu.memory_space<vmem>>, vector<4x8x128xf32>
      tpu.vector_store %arg7[%c0_40, %c0_41, %c0_42], %49 {strides = array<i32>} : memref<4x8x128xf32, #tpu.memory_space<vmem>>, vector<4x8x128xf32>,
      %cst_43 = arith.constant 0.000000e+00 : f32
      %51 = vector.broadcast %cst_43 : f32 to vector<4x8x128xf32>
      %c0_44 = arith.constant 0 : index
      %c0_45 = arith.constant 0 : index
      %c0_46 = arith.constant 0 : index
      %52 = vector.load %arg8[%c0_44, %c0_45, %c0_46] : memref<4x8x128xf32, #tpu.memory_space<vmem>>, vector<4x8x128xf32>
      tpu.vector_store %arg8[%c0_44, %c0_45, %c0_46], %51 {strides = array<i32>} : memref<4x8x128xf32, #tpu.memory_space<vmem>>, vector<4x8x128xf32>,
    } else {
    }
    %c0 = arith.constant 0 : index
    %c0_1 = arith.constant 0 : index
    %c0_2 = arith.constant 0 : index
    %c0_3 = arith.constant 0 : index
    %3 = vector.load %arg3[%c0, %c0_1, %c0_2, %c0_3] : memref<1x4x8x128xf32, #tpu.memory_space<vmem>>, vector<1x4x8x128xf32>
    %4 = vector.shape_cast %3 : vector<1x4x8x128xf32> to vector<4x8x128xf32>
    %c0_4 = arith.constant 0 : index
    %c0_5 = arith.constant 0 : index
    %c0_6 = arith.constant 0 : index
    %c0_7 = arith.constant 0 : index
    %5 = vector.load %arg4[%c0_4, %c0_5, %c0_6, %c0_7] : memref<1x4x8x128xf32, #tpu.memory_space<vmem>>, vector<1x4x8x128xf32>
    %6 = vector.shape_cast %5 : vector<1x4x8x128xf32> to vector<4x8x128xf32>
    %cst = arith.constant 0.000000e+00 : f32
    %7 = vector.broadcast %cst : f32 to vector<4x8x128xf32>
    %8 = arith.maximumf %4, %7 : vector<4x8x128xf32>
    %9 = arith.mulf %4, %6 : vector<4x8x128xf32>
    %10 = arith.subf %8, %9 : vector<4x8x128xf32>
    %11 = math.absf %4 : vector<4x8x128xf32>
    %cst_8 = arith.constant 0.000000e+00 : f32
    %12 = vector.broadcast %cst_8 : f32 to vector<4x8x128xf32>
    %13 = arith.subf %12, %11 : vector<4x8x128xf32>
    %14 = math.exp %13 : vector<4x8x128xf32>
    %15 = math.log1p %14 : vector<4x8x128xf32>
    %16 = arith.addf %10, %15 : vector<4x8x128xf32>
    %cst_9 = arith.constant 0.000000e+00 : f32
    %17 = vector.broadcast %cst_9 : f32 to vector<4x8x128xf32>
    %18 = arith.cmpf ogt, %4, %17 : vector<4x8x128xf32>
    %cst_10 = arith.constant 1.000000e+00 : f32
    %cst_11 = arith.constant 0.000000e+00 : f32
    %19 = vector.broadcast %cst_10 : f32 to vector<4x8x128xf32>
    %20 = vector.broadcast %cst_11 : f32 to vector<4x8x128xf32>
    %21 = arith.select %18, %19, %20 : vector<4x8x128xi1>, vector<4x8x128xf32>
    %cst_12 = arith.constant 0.000000e+00 : f32
    %22 = vector.broadcast %cst_12 : f32 to vector<4x8x128xf32>
    %23 = arith.cmpf ogt, %6, %22 : vector<4x8x128xf32>
    %cst_13 = arith.constant 1.000000e+00 : f32
    %cst_14 = arith.constant 0.000000e+00 : f32
    %24 = vector.broadcast %cst_13 : f32 to vector<4x8x128xf32>
    %25 = vector.broadcast %cst_14 : f32 to vector<4x8x128xf32>
    %26 = arith.select %23, %24, %25 : vector<4x8x128xi1>, vector<4x8x128xf32>
    %27 = arith.mulf %21, %26 : vector<4x8x128xf32>
    %28 = arith.addf %21, %26 : vector<4x8x128xf32>
    %c0_15 = arith.constant 0 : index
    %c0_16 = arith.constant 0 : index
    %29 = vector.load %arg6[%c0_15, %c0_16] : memref<8x128xf32, #tpu.memory_space<vmem>>, vector<8x128xf32>
    %30 = vector.shape_cast %16 : vector<4x8x128xf32> to vector<4x1x8x128xf32>
    %cst_17 = arith.constant dense<0.000000e+00> : vector<8x128xf32>
    %31 = vector.multi_reduction <add>, %30, %cst_17 [0, 1] : vector<4x1x8x128xf32> to vector<8x128xf32>
    %32 = arith.addf %29, %31 : vector<8x128xf32>
    %c0_18 = arith.constant 0 : index
    %c0_19 = arith.constant 0 : index
    %33 = vector.load %arg6[%c0_18, %c0_19] : memref<8x128xf32, #tpu.memory_space<vmem>>, vector<8x128xf32>
    tpu.vector_store %arg6[%c0_18, %c0_19], %32 {strides = array<i32>} : memref<8x128xf32, #tpu.memory_space<vmem>>, vector<8x128xf32>,
    %c0_20 = arith.constant 0 : index
    %c0_21 = arith.constant 0 : index
    %c0_22 = arith.constant 0 : index
    %34 = vector.load %arg7[%c0_20, %c0_21, %c0_22] : memref<4x8x128xf32, #tpu.memory_space<vmem>>, vector<4x8x128xf32>
    %35 = vector.shape_cast %27 : vector<4x8x128xf32> to vector<4x1x8x128xf32>
    %cst_23 = arith.constant dense<0.000000e+00> : vector<4x8x128xf32>
    %36 = vector.multi_reduction <add>, %35, %cst_23 [1] : vector<4x1x8x128xf32> to vector<4x8x128xf32>
    %37 = arith.addf %34, %36 : vector<4x8x128xf32>
    %c0_24 = arith.constant 0 : index
    %c0_25 = arith.constant 0 : index
    %c0_26 = arith.constant 0 : index
    %38 = vector.load %arg7[%c0_24, %c0_25, %c0_26] : memref<4x8x128xf32, #tpu.memory_space<vmem>>, vector<4x8x128xf32>
    tpu.vector_store %arg7[%c0_24, %c0_25, %c0_26], %37 {strides = array<i32>} : memref<4x8x128xf32, #tpu.memory_space<vmem>>, vector<4x8x128xf32>,
    %c0_27 = arith.constant 0 : index
    %c0_28 = arith.constant 0 : index
    %c0_29 = arith.constant 0 : index
    %39 = vector.load %arg8[%c0_27, %c0_28, %c0_29] : memref<4x8x128xf32, #tpu.memory_space<vmem>>, vector<4x8x128xf32>
    %40 = vector.shape_cast %28 : vector<4x8x128xf32> to vector<4x1x8x128xf32>
    %cst_30 = arith.constant dense<0.000000e+00> : vector<4x8x128xf32>
    %41 = vector.multi_reduction <add>, %40, %cst_30 [1] : vector<4x1x8x128xf32> to vector<4x8x128xf32>
    %42 = arith.addf %39, %41 : vector<4x8x128xf32>
    %c0_31 = arith.constant 0 : index
    %c0_32 = arith.constant 0 : index
    %c0_33 = arith.constant 0 : index
    %43 = vector.load %arg8[%c0_31, %c0_32, %c0_33] : memref<4x8x128xf32, #tpu.memory_space<vmem>>, vector<4x8x128xf32>
    tpu.vector_store %arg8[%c0_31, %c0_32, %c0_33], %42 {strides = array<i32>} : memref<4x8x128xf32, #tpu.memory_space<vmem>>, vector<4x8x128xf32>,
    %c0_i32_34 = arith.constant 0 : i32
    %44 = arith.cmpi eq, %arg1, %c0_i32_34 : i32
    %45 = arith.extui %44 : i1 to i32
    %c0_i32_35 = arith.constant 0 : i32
    %46 = arith.cmpi ne, %45, %c0_i32_35 : i32
    scf.if %46 {
      %c0_36 = arith.constant 0 : index
      %c0_37 = arith.constant 0 : index
      %c0_38 = arith.constant 0 : index
      %47 = vector.load %arg7[%c0_36, %c0_37, %c0_38] : memref<4x8x128xf32, #tpu.memory_space<vmem>>, vector<4x8x128xf32>
      %48 = vector.shape_cast %47 : vector<4x8x128xf32> to vector<4x1024xf32>
      %cst_39 = arith.constant dense<0.000000e+00> : vector<4xf32>
      %49 = vector.multi_reduction <add>, %48, %cst_39 [1] : vector<4x1024xf32> to vector<4xf32>
      %50 = vector.shape_cast %49 : vector<4xf32> to vector<4x1xf32>
      %c0_40 = arith.constant 0 : index
      %c0_41 = arith.constant 0 : index
      %c0_42 = arith.constant 0 : index
      %51 = vector.load %arg8[%c0_40, %c0_41, %c0_42] : memref<4x8x128xf32, #tpu.memory_space<vmem>>, vector<4x8x128xf32>
      %52 = vector.shape_cast %51 : vector<4x8x128xf32> to vector<4x1024xf32>
      %cst_43 = arith.constant dense<0.000000e+00> : vector<4xf32>
      %53 = vector.multi_reduction <add>, %52, %cst_43 [1] : vector<4x1024xf32> to vector<4xf32>
      %54 = vector.shape_cast %53 : vector<4xf32> to vector<4x1xf32>
      %55 = arith.subf %54, %50 : vector<4x1xf32>
      %c0_44 = arith.constant 0 : index
      %c0_45 = arith.constant 0 : index
      %56 = vector.load %arg2[%c0_44, %c0_45] : memref<4x1xf32, #tpu.memory_space<vmem>>, vector<4x1xf32>
      %57 = arith.mulf %56, %50 : vector<4x1xf32>
      %58 = arith.divf %57, %55 : vector<4x1xf32>
      %59 = vector.shape_cast %58 : vector<4x1xf32> to vector<1x4x1xf32>
      %cst_46 = arith.constant dense<0.000000e+00> : vector<1xf32>
      %60 = vector.multi_reduction <add>, %59, %cst_46 [1, 2] : vector<1x4x1xf32> to vector<1xf32>
      %61 = vector.shape_cast %60 : vector<1xf32> to vector<1x1x1xf32>
      %62 = vector.extract %61[0, 0, 0] : f32 from vector<1x1x1xf32>
      %c0_47 = arith.constant 0 : index
      %c0_48 = arith.constant 0 : index
      %63 = vector.load %arg6[%c0_47, %c0_48] : memref<8x128xf32, #tpu.memory_space<vmem>>, vector<8x128xf32>
      %64 = vector.shape_cast %63 : vector<8x128xf32> to vector<1x8x128xf32>
      %cst_49 = arith.constant dense<0.000000e+00> : vector<1xf32>
      %65 = vector.multi_reduction <add>, %64, %cst_49 [1, 2] : vector<1x8x128xf32> to vector<1xf32>
      %66 = vector.shape_cast %65 : vector<1xf32> to vector<1x1x1xf32>
      %67 = vector.extract %66[0, 0, 0] : f32 from vector<1x1x1xf32>
      %68 = tpu.iota {dimensions = array<i32: 0>} : vector<2x128xi32>
      %c0_i32_50 = arith.constant 0 : i32
      %69 = vector.broadcast %c0_i32_50 : i32 to vector<2x128xi32>
      %70 = arith.cmpi eq, %68, %69 : vector<2x128xi32>
      %71 = vector.broadcast %67 : f32 to vector<2x128xf32>
      %72 = vector.broadcast %62 : f32 to vector<2x128xf32>
      %73 = arith.select %70, %71, %72 : vector<2x128xi1>, vector<2x128xf32>
      %c0_51 = arith.constant 0 : index
      %c0_52 = arith.constant 0 : index
      %c0_53 = arith.constant 0 : index
      %74 = vector.load %arg5[%c0_51, %c0_52, %c0_53] : memref<1x2x128xf32, #tpu.memory_space<vmem>>, vector<1x2x128xf32>
      %75 = vector.shape_cast %74 : vector<1x2x128xf32> to vector<2x128xf32>
      %76 = vector.shape_cast %73 : vector<2x128xf32> to vector<1x2x128xf32>
      tpu.vector_store %arg5[%c0_51, %c0_52, %c0_53], %76 {strides = array<i32>} : memref<1x2x128xf32, #tpu.memory_space<vmem>>, vector<1x2x128xf32>,
    } else {
    }
    return
  }
  func.func @transform_0(%arg0: i32, %arg1: i32) -> (i32, i32) {
    %c0_i32 = arith.constant 0 : i32
    %c0_i32_0 = arith.constant 0 : i32
    %c0_i32_1 = arith.constant 0 : i32
    return %c0_i32, %c0_i32_0 : i32, i32
  }
  func.func @transform_1(%arg0: i32, %arg1: i32) -> (i32, i32, i32, i32) {
    %c0_i32 = arith.constant 0 : i32
    %c0_i32_0 = arith.constant 0 : i32
    %c0_i32_1 = arith.constant 0 : i32
    return %arg0, %c0_i32, %arg1, %c0_i32_0 : i32, i32, i32, i32
  }
  func.func @transform_2(%arg0: i32, %arg1: i32) -> (i32, i32, i32, i32) {
    %c0_i32 = arith.constant 0 : i32
    %c0_i32_0 = arith.constant 0 : i32
    %c0_i32_1 = arith.constant 0 : i32
    return %arg0, %c0_i32, %arg1, %c0_i32_0 : i32, i32, i32, i32
  }
  func.func @transform_3(%arg0: i32, %arg1: i32) -> (i32, i32, i32) {
    %c0_i32 = arith.constant 0 : i32
    %c0_i32_0 = arith.constant 0 : i32
    %c0_i32_1 = arith.constant 0 : i32
    return %arg0, %c0_i32, %c0_i32_0 : i32, i32, i32
  }
}

</mosaic_0001>

<bundles_post_ra>
// kernel: tpu_custom_call.1
= control target key start
LH: loop header
LB: loop body
LE: loop exit
PB: predicated region body
PF: predicated region fallthrough
CT: control target
= control target key end

     0   :  { %s1268_s0 = inlined_call_operand.vmem [shape: f32[4,1], index: 0, kind: input, shape index: {}]   ;;  %s1269_s1 = inlined_call_operand.hbm [shape: f32[2,4,8,128], index: 1, kind: input, shape index: {}]   ;;  %s1270_s2 = inlined_call_operand.hbm [shape: f32[2,4,8,128], index: 2, kind: input, shape index: {}]   ;;  %s1271_s3 = inlined_call_operand.hbm [shape: f32[2,2,128], index: 3, kind: output, shape index: {}]  }
   0x1   :  { %1272 = sst [smem:[#allocation14_spill]] %s1269_s1 }
   0x2   :  { %8 = vsyncpa [#allocation6], 0 }
   0x3   :  { %10 = vsyncpa [#allocation6 + $0x1], 0 }
   0x4   :  { %11 = vsyncpa [#allocation9], 0 }
   0x5   :  { %13 = vsyncpa [#allocation9 + $0x1], 0 }
   0x6   :  { %14 = vsyncpa [#allocation7], 0 }
   0x7   :  { %16 = vsyncpa [#allocation7 + $0x1], 0  ;;  %s1015_s12 = smov 0   ;;  %s1017_s13 = smov 0  }
   0x8   :  { %s1019_s14 = smov 0   ;;  %s1021_s15 = smov 0  }
   0x9   :  { %s1023_s16 = smov 0   ;;  %s1025_s17 = smov 0  }
   0xa LB: > { %s728_s18 = sadd.s32 4294967295, %s988_s17   ;;  %s729_s19 = sadd.s32 4294967294, %s988_s17   ;;  %s988_s17 = sphi %s1025_s17, %s22_s17   ;;  %s984_s16 = sphi %s1023_s16, %s1289_s16   ;;  %s980_s15 = sphi %s1021_s15, %s1288_s15   ;;  %s976_s14 = sphi %s1019_s14, %s1287_s14   ;;  %s972_s13 = sphi %s1017_s13, %s1286_s13   ;;  %s968_s12 = sphi %s1015_s12, %s1285_s12  }
   0xb   : > { %s34_s20 = sadd.s32 1, %s984_s16  ;;  %s64_s21 = sadd.s32 1, %s976_s14 }
   0xc   : > { %p36_p0 = scmp.ge.s32.totalorder %s34_s20, 2  ;;  %p71_p1 = scmp.ne.s32.totalorder %s976_s14, %s972_s13 }
   0xd   : > { %p72_p2 = scmp.eq.s32.totalorder %s988_s17, 0  ;;  %p77_p3 = scmp.ne.s32.totalorder %s972_s13, %s968_s12 }
   0xe   : > { %s1291_s20 = smov (%p36_p0, %s34_s20), 0  ;;  %p78_p5 = scmp.eq.s32.totalorder %s728_s18, 0 }
   0xf   : > { %p1056_p4 = por %p72_p2, %p71_p1  ;;  %s59_s23 = ssub.s32 %s984_s16, %s1291_s20 }
  0x10   : > { %p129_p6 = scmp.eq.s32.totalorder %s728_s18, 1  ;;  %p62_p7 = scmp.eq.s32.totalorder %s59_s23, 0 }
  0x11   : > { %p1062_p8 = por %p78_p5, %p77_p3  ;;  %p135_p10 = scmp.eq.s32.totalorder %s729_s19, 1 }
  0x12   : > { %p1066_p9 = por %p129_p6, %p71_p1  ;;  %p731_p12 = scmp.ge.s32.totalorder %s988_s17, 2 }
  0x13   : > { %s1071_s26 = scalar_select %p62_p7, %s976_s14, %s64_s21  }
  0x14   : > { %p1073_p11 = por %p135_p10, %p77_p3  ;;  %p769_p13 = scmp.lt.s32.totalorder %s988_s17, 2 }
  0x15   : > { %s1080_s28 = sand.u32 1, %s976_s14   ;;  %s746_s30 = sshll.u32 %s984_s16, 5 }
  0x16   : > { %s732_s29 = sshll.u32 %s1080_s28, 5  ;;  %s1277_s1 = sld [smem:[#allocation14_spill]] }
  0x17   : > { %s162_s7 = scalar_lea.vmem [#allocation5], %s732_s29  ;;  %p1089_p0 = pnand %p769_p13, %p1056_p4 }
  0x18   : > { %s171_s8 = sshll.u32 %s162_s7, 4  ;;  %p738_p1 = scmp.ge.s32.totalorder %s988_s17, 1  ;;  %s172_s8 = int_to_ptr.vmem [resolvable:$true] %s171_s8 }
  0x19   : > { %s159_s11 = scalar_lea.sflag [#allocation6], %s1080_s28  ;;  %s990_s18 = smov 128  }
  0x1a   : > { %s991_s19 = smov 8   ;;  %p202_p2 = scmp.lt.s32.totalorder %s988_s17, 3 }
  0x1b   : > { %s191_s4 = scalar_lea.hbm %s1270_s2, %s746_s30  ;;  %s185_s22 = scalar_lea.vmem [#allocation8], %s732_s29 }
  0x1c   : > { %s168_s6 = scalar_lea.hbm %s1277_s1, %s746_s30  ;;  %p203_p3 = pnand %p738_p1, %p202_p2 }
  0x1d   : > { %s169_s9 = sshll.u32 %s168_s6, 4  ;;  %s192_s5 = sshll.u32 %s191_s4, 4  ;;  %s170_s9 = int_to_ptr.hbm [resolvable:$true] %s169_s9  ;;  %s193_s5 = int_to_ptr.hbm [resolvable:$true] %s192_s5 }
  0x1e   : > { %761 = dma.hbm_to_vmem [thread:$0]  (!%p1089_p0), %s170_s9, 512, %s172_s8, %s159_s11, %s990_s18, %s990_s18, %s991_s19  }
  0x1f   : > { %s194_s6 = sshll.u32 %s185_s22, 4  ;;  %s182_s7 = scalar_lea.sflag [#allocation9], %s1080_s28  ;;  %s195_s6 = int_to_ptr.vmem [resolvable:$true] %s194_s6 }
  0x20   : > { %764 = dma.hbm_to_vmem [thread:$0]  (!%p1089_p0), %s193_s5, 512, %s195_s6, %s182_s7, %s990_s18, %s990_s18, %s991_s19  }
  0x21   : > { %206 = sbr.rel (%p203_p3) target bundleno = 414 (0x19e), region = 32  ;;  %s1105_s1 = sand.u32 (!%p203_p3), 1, %s972_s13  }
  0x22   : > { %s739_s8 = sshll.u32 (!%p203_p3), %s1105_s1, 5  ;;  %s209_s9 = scalar_lea.sflag (!%p203_p3), [#allocation6], %s1105_s1 }
  0x23   : > { %s212_s11 = scalar_lea.vmem (!%p203_p3), [#allocation5], %s739_s8 }
  0x26   : > { %955 = dma.done.wait (%p1062_p8), %s209_s9, 512  }
  0x27   : > { %957 = vsyncadd (%p1062_p8), %s209_s9, 4294966784  ;;  %s219_s28 = scalar_lea.sflag [#allocation9], %s1105_s1  ;;  %s222_s29 = scalar_lea.vmem [#allocation8], %s739_s8 }
  0x28   : > { %959 = dma.done.wait (%p1062_p8), %s219_s28, 512  }
  0x29   : > { %961 = vsyncadd (%p1062_p8), %s219_s28, 4294966784  ;;  %v1118_v0 = vld [vmem:[%s212_s11] sm:$0xff]  ;;  %v1120_v1 = vld [vmem:[%s212_s11 + $0x8] sm:$0xff]  ;;  %v992_v8 = vmov 0.0   ;;  %v993_v11 = vmov 1983009808  }
  0x2a   : > { %v1122_v2 = vld [vmem:[%s212_s11 + $0x10] sm:$0xff]  ;;  %v1124_v3 = vld [vmem:[%s212_s11 + $0x18] sm:$0xff]  ;;  %v1126_v4 = vld [vmem:[%s222_s29] sm:$0xff]  ;;  %vm340_vm0 = vcmp.gt.f32.partialorder %v1118_v0, 0.0  ;;  %vm341_vm1 = vcmp.gt.f32.partialorder %v1120_v1, 0.0  ;;  %v415_v12 = vunpack.c.l.s4 %v993_v11  ;;  %vm410_vm8 = vcmask 1047556  }
  0x2b   : > { %v1129_v5 = vld [vmem:[%s222_s29 + $0x8] sm:$0xff]  ;;  %v1131_v6 = vld [vmem:[%s222_s29 + $0x10] sm:$0xff]  ;;  %vm342_vm2 = vcmp.gt.f32.partialorder %v1122_v2, 0.0  ;;  %vm343_vm3 = vcmp.gt.f32.partialorder %v1124_v3, 0.0  ;;  %v1136_v7 = vld [vmem:[%s222_s29 + $0x18] sm:$0xff]  ;;  %v344_v9 = vsel %vm340_vm0, 1.0, %v992_v8 }
  0x2c   : > { %v345_v10 = vsel %vm341_vm1, 1.0, %v992_v8  ;;  %vm348_vm4 = vcmp.gt.f32.partialorder %v1126_v4, 0.0  ;;  %v346_v13 = vsel %vm342_vm2, 1.0, %v992_v8  ;;  %v347_v14 = vsel %vm343_vm3, 1.0, %v992_v8  ;;  %s741_s10 = sshll.u32 %s1105_s1, 1  ;;  %s743_s18 = sshll.u32 %s980_s15, 1 }
  0x2d   : > { %vm349_vm5 = vcmp.gt.f32.partialorder %v1129_v5, 0.0  ;;  %vm350_vm6 = vcmp.gt.f32.partialorder %v1131_v6, 0.0  ;;  %vm351_vm7 = vcmp.gt.f32.partialorder %v1136_v7, 0.0  ;;  %v352_v15 = vsel %vm348_vm4, 1.0, %v992_v8  ;;  %s618_s23 = scalar_lea.hbm %s1271_s3, %s743_s18  ;;  %s250_s4 = scalar_lea.vmem [#allocation10], %s741_s10 }
  0x2e   : > { %v353_v16 = vsel %vm349_vm5, 1.0, %v992_v8  ;;  %v354_v17 = vsel %vm350_vm6, 1.0, %v992_v8  ;;  %v355_v18 = vsel %vm351_vm7, 1.0, %v992_v8  ;;  %v356_v19 = vmul.f32 %v352_v15, %v344_v9  ;;  %s620_s5 = sshll.u32 %s250_s4, 4  ;;  %s622_s6 = sshll.u32 %s618_s23, 4  ;;  %s621_s5 = int_to_ptr.vmem [resolvable:$true] %s620_s5  ;;  %s623_s6 = int_to_ptr.hbm [resolvable:$true] %s622_s6 }
  0x2f   : > { %v357_v20 = vmul.f32 %v353_v16, %v345_v10  ;;  %v358_v21 = vmul.f32 %v354_v17, %v346_v13  ;;  %v359_v22 = vmul.f32 %v355_v18, %v347_v14  ;;  %v416_v24 = vunpack.c.0.s8 %v415_v12  ;;  %s608_s8 = scalar_lea.sflag [#allocation7], %s1105_s1  ;;  %s916_s15 = sshra.s32 %s623_s6, 4  ;;  %s917_s15 = int_to_ptr.hbm [resolvable:$true] %s916_s15 }
  0x30   : > { %v412_v23 = vrot.slane %v356_v19, 4  ;;  %v360_v25 = vadd.f32 %v352_v15, %v344_v9  ;;  %v994_v29 = vmov 1934713408   ;;  %v362_v32 = vadd.f32 %v354_v17, %v346_v13  ;;  %s918_s9 = scalar_lea.hbm %s917_s15, 2  ;;  %s922_s29 = scalar_lea.hbm %s1271_s3, 4 }
  0x31   : > { %v409_v26 = vrot.slane %v358_v21, 4  ;;  %v422_v27 = vrot.slane %v359_v22, 4  ;;  %v424_v28 = vrot.slane %v357_v20, 4  ;;  %v439_v30 = vunpack.c.l.s4 %v994_v29  ;;  %p919_p4 = scmp.ne.s32.totalorder %s917_s15, %s918_s9  ;;  %p923_p7 = scmp.lt.s32.totalorder %s917_s15, %s1271_s3 }
  0x32   : > { %v413_v31 = vsel %vm410_vm8, %v358_v21, %v412_v23  ;;  %v363_v33 = vadd.f32 %v355_v18, %v347_v14  ;;  %v490_v34 = vrot.slane %v360_v25, 4  ;;  %v361_v42 = vadd.f32 %v353_v16, %v345_v10  ;;  %p924_p8 = scmp.lt.s32.totalorder %s922_s29, %s918_s9 }
  0x33   : > { %v411_v35 = vsel %vm410_vm8, %v409_v26, %v356_v19  ;;  %v421_v36 = vperm.slane %v413_v31, %v416_v24  ;;  %v423_v37 = vsel %vm410_vm8, %v422_v27, %v357_v20  ;;  %v425_v38 = vsel %vm410_vm8, %v359_v22, %v424_v28  ;;  %p920_p5 = pnand %p919_p4, %p1066_p9 }
  0x34   : > { %v417_v39 = vperm.slane %v411_v35, %v416_v24  ;;  %v429_v40 = vperm.slane %v423_v37, %v416_v24  ;;  %v433_v41 = vperm.slane %v425_v38, %v416_v24  ;;  %v440_v43 = vunpack.c.0.s8 %v439_v30  ;;  %p925_p10 = por %p924_p8, %p923_p7 }
  0x35   : > { %v448_v44 = vrot.slane %v421_v36, 4  ;;  %v500_v45 = vrot.slane %v363_v33, 4  ;;  %v488_v49 = vrot.slane %v362_v32, 4  ;;  %vm466_vm9 = vcmask 1043456   ;;  %p921_p6 = pneg %p920_p5 }
  0x36   : > { %v434_v46 = vrot.slane %v429_v40, 4  ;;  %v436_v47 = vrot.slane %v417_v39, 4  ;;  %v446_v48 = vrot.slane %v433_v41, 4  ;;  %v491_v50 = vsel %vm410_vm8, %v362_v32, %v490_v34 }
  0x37   : > { %v501_v54 = vsel %vm410_vm8, %v500_v45, %v361_v42  ;;  %v449_v57 = vsel %vm410_vm8, %v433_v41, %v448_v44  ;;  %v489_v59 = vsel %vm410_vm8, %v488_v49, %v360_v25  ;;  %v502_v60 = vrot.slane %v361_v42, 4  ;;  %p926_p13 = pnand %p925_p10, %p921_p6 }
  0x38   : > { %v435_v51 = vsel %vm410_vm8, %v434_v46, %v417_v39  ;;  %v437_v52 = vsel %vm410_vm8, %v429_v40, %v436_v47  ;;  %v447_v53 = vsel %vm410_vm8, %v446_v48, %v421_v36  ;;  %v507_v63 = vperm.slane %v501_v54, %v416_v24 }
  0x39   : > { %v441_v55 = vperm.slane %v435_v51, %v440_v43  ;;  %v445_v56 = vperm.slane %v437_v52, %v440_v43  ;;  %v453_v58 = vperm.slane %v447_v53, %v440_v43  ;;  %v457_v8 = vperm.slane %v449_v57, %v440_v43 }
  0x3a   : > { %v499_v10 = vperm.slane %v491_v50, %v416_v24  ;;  %v503_v11 = vsel %vm410_vm8, %v363_v33, %v502_v60  ;;  %v495_v15 = vperm.slane %v489_v59, %v416_v24  ;;  %v512_v20 = vrot.slane %v507_v63, 4 }
  0x3b   : > { %v458_v61 = vrot.slane %v441_v55, 4  ;;  %v460_v62 = vrot.slane %v445_v56, 4  ;;  %v467_v9 = vsel %vm466_vm9, %v441_v55, 0.0  ;;  %v462_v14 = vrot.slane %v453_v58, 4 }
  0x3c   : > { %v470_v17 = vsel %vm466_vm9, %v445_v56, 0.0  ;;  %v511_v18 = vperm.slane %v503_v11, %v416_v24  ;;  %v514_v21 = vrot.slane %v495_v15, 4  ;;  %v526_v22 = vrot.slane %v499_v10, 4 }
  0x3d   : > { %v459_v12 = vsel %vm410_vm8, 0.0, %v458_v61  ;;  %v461_v13 = vsel %vm410_vm8, 0.0, %v460_v62  ;;  %v464_v23 = vrot.slane %v457_v8, 4  ;;  %v463_v27 = vsel %vm410_vm8, 0.0, %v462_v14 }
  0x3e   : > { %v468_v16 = vsel %vm466_vm9, %v459_v12, 0.0  ;;  %v472_v25 = vsel %vm466_vm9, %v461_v13, 0.0  ;;  %v524_v26 = vrot.slane %v511_v18, 4  ;;  %v513_v29 = vsel %vm410_vm8, %v512_v20, %v495_v15 }
  0x3f   : > { %v469_v19 = vadd.f32 %v468_v16, %v467_v9  ;;  %v515_v30 = vsel %vm410_vm8, %v507_v63, %v514_v21  ;;  %v474_v31 = vsel %vm466_vm9, %v453_v58, 0.0  ;;  %v519_v32 = vperm.slane %v513_v29, %v440_v43 }
  0x40   : > { %v523_v33 = vperm.slane %v515_v30, %v440_v43  ;;  %v525_v24 = vsel %vm410_vm8, %v524_v26, %v499_v10  ;;  %v527_v35 = vsel %vm410_vm8, %v511_v18, %v526_v22  ;;  %v476_v37 = vsel %vm466_vm9, %v463_v27, 0.0 }
  0x41   : > { %v471_v28 = vadd.f32 %v470_v17, %v469_v19  ;;  %v531_v36 = vperm.slane %v525_v24, %v440_v43  ;;  %v536_v38 = vrot.slane %v519_v32, 4  ;;  %v465_v40 = vsel %vm410_vm8, 0.0, %v464_v23 }
  0x42   : > { %v538_v39 = vrot.slane %v523_v33, 4  ;;  %v478_v42 = vsel %vm466_vm9, %v457_v8, 0.0  ;;  %v544_v44 = vsel %vm466_vm9, %v519_v32, 0.0  ;;  %v535_v45 = vperm.slane %v527_v35, %v440_v43 }
  0x43   : > { %v473_v34 = vadd.f32 %v472_v25, %v471_v28  ;;  %v537_v46 = vsel %vm410_vm8, 0.0, %v536_v38  ;;  %v540_v48 = vrot.slane %v531_v36, 4  ;;  %v547_v51 = vsel %vm466_vm9, %v523_v33, 0.0 }
  0x44   : > { %v539_v47 = vsel %vm410_vm8, 0.0, %v538_v39  ;;  %v545_v50 = vsel %vm466_vm9, %v537_v46, 0.0  ;;  %v480_v52 = vsel %vm466_vm9, %v465_v40, 0.0  ;;  %v542_v57 = vrot.slane %v535_v45, 4 }
  0x45   : > { %v475_v41 = vadd.f32 %v474_v31, %v473_v34  ;;  %v546_v53 = vadd.f32 %v545_v50, %v544_v44  ;;  %v549_v55 = vsel %vm466_vm9, %v539_v47, 0.0  ;;  %v541_v56 = vsel %vm410_vm8, 0.0, %v540_v48 }
  0x46   : > { %v551_v59 = vsel %vm466_vm9, %v531_v36, 0.0  ;;  %v553_v61 = vsel %vm466_vm9, %v541_v56, 0.0  ;;  %v543_v62 = vsel %vm410_vm8, 0.0, %v542_v57  ;;  %v555_v8 = vsel %vm466_vm9, %v535_v45, 0.0 }
  0x47   : > { %v477_v49 = vadd.f32 %v476_v37, %v475_v41  ;;  %v548_v43 = vadd.f32 %v547_v51, %v546_v53  ;;  %v557_v10 = vsel %vm466_vm9, %v543_v62, 0.0  ;;  %v284_v13 = vand.u32 2147483647, %v1118_v0 }
  0x48   : > { %v285_v14 = vand.u32 2147483647, %v1120_v1  ;;  %v286_v15 = vand.u32 2147483647, %v1122_v2  ;;  %v287_v18 = vand.u32 2147483647, %v1124_v3  ;;  %v276_v48 = vmul.f32 %v1126_v4, %v1118_v0 }
  0x49   : > { %v479_v54 = vadd.f32 %v478_v42, %v477_v49  ;;  %v550_v60 = vadd.f32 %v549_v55, %v548_v43  ;;  %v288_v16 = vsub.f32 0.0, %v284_v13  ;;  %v272_v46 = vmax.f32 %v1118_v0, 0.0 }
  0x4a   : > { %v289_v17 = vsub.f32 0.0, %v285_v14  ;;  %v290_v19 = vsub.f32 0.0, %v286_v15  ;;  %v291_v22 = vsub.f32 0.0, %v287_v18  ;;  %v273_v47 = vmax.f32 %v1120_v1, 0.0 }
  0x4b   : > { %v481_v58 = vadd.f32 %v480_v52, %v479_v54  ;;  %v552_v63 = vadd.f32 %v551_v59, %v550_v60  ;;  %v292_v20 = vmul.f32 1.442695, %v288_v16  ;;  %v277_v49 = vmul.f32 %v1129_v5, %v1120_v1 }
  0x4c   : > { %v294_v21 = vmul.f32 1.442695, %v289_v17  ;;  %v296_v23 = vmul.f32 1.442695, %v290_v19  ;;  %v298_v25 = vmul.f32 1.442695, %v291_v22  ;;  %v278_v5 = vmul.f32 %v1131_v6, %v1122_v2 }
  0x4d   : > { %482 = vadd.xlane.f32.xlu0 %v481_v58  ;;  %v554_v9 = vadd.f32 %v553_v61, %v552_v63  ;;  %824 = vpow2.f32 %v292_v20  ;;  %v274_v1 = vmax.f32 %v1122_v2, 0.0  ;;  %v280_v59 = vsub.f32 %v272_v46, %v276_v48  ;;  %v562_v17 = vld [vmem:[%s1268_s0] sm:$0xf] }
  0x4e   : > { %826 = vpow2.f32 %v294_v21  ;;  %v281_v60 = vsub.f32 %v273_v47, %v277_v49  ;;  %v275_v13 = vmax.f32 %v1124_v3, 0.0  ;;  %v279_v16 = vmul.f32 %v1136_v7, %v1124_v3 }
  0x4f   : > { %v556_v11 = vadd.f32 %v555_v8, %v554_v9  ;;  %828 = vpow2.f32 %v296_v23  ;;  %v282_v18 = vsub.f32 %v274_v1, %v278_v5  ;;  %vm579_vm2 = vcmask 3072  }
  0x50   : > { %830 = vpow2.f32 %v298_v25 }
  0x51   : > { %v558_v12 = vadd.f32 %v557_v10, %v556_v11 }
  0x53   : > { %v825_v26 = vpop.eup %824 }
  0x54   : > { %v827_v28 = vpop.eup %826  ;;  %v300_v29 = vadd.f32 1.0, %v825_v26  ;;  %v303_v24 = vmul.f32 -0.5, %v825_v26  ;;  %v306_v39 = vand.u32 2147483647, %v825_v26 }
  0x55   : > { %559 = vadd.xlane.f32.xlu0 %v558_v12  ;;  %v829_v30 = vpop.eup %828  ;;  %v309_v31 = vadd.f32 1.0, %v827_v28  ;;  %v312_v35 = vmul.f32 -0.5, %v827_v28  ;;  %v315_v45 = vand.u32 2147483647, %v827_v28 }
  0x56   : > { %832 = vlog2.f32 %v300_v29  ;;  %v318_v32 = vadd.f32 1.0, %v829_v30  ;;  %v1188_v33 = vpop.eup %830  ;;  %v304_v38 = vadd.f32 1.0, %v303_v24  ;;  %v321_v42 = vmul.f32 -0.5, %v829_v30 }
  0x57   : > { %834 = vlog2.f32 %v309_v31  ;;  %v327_v37 = vadd.f32 1.0, %v1188_v33  ;;  %v313_v41 = vadd.f32 1.0, %v312_v35  ;;  %vm1198_vm10 = vcmp.lt.f32.partialorder %v306_v39, 0.0004427343 }
  0x58   : > { %836 = vlog2.f32 %v318_v32  ;;  %v305_v51 = vmul.f32 %v825_v26, %v304_v38  ;;  %v322_v56 = vadd.f32 1.0, %v321_v42  ;;  %v330_v57 = vmul.f32 -0.5, %v1188_v33 }
  0x59   : > { %v314_v55 = vmul.f32 %v827_v28, %v313_v41  ;;  %vm1203_vm11 = vcmp.lt.f32.partialorder %v315_v45, 0.0004427343  ;;  %v324_v0 = vand.u32 2147483647, %v829_v30  ;;  %v333_v2 = vand.u32 2147483647, %v1188_v33 }
  0x5a   : > { %v323_v10 = vmul.f32 %v829_v30, %v322_v56  ;;  %v331_v11 = vadd.f32 1.0, %v330_v57  ;;  %v283_v29 = vsub.f32 %v275_v13, %v279_v16 }
  0x5b   : > { %vm1215_vm12 = vcmp.lt.f32.partialorder %v324_v0, 0.0004427343  ;;  %vm334_vm0 = vcmp.lt.f32.partialorder %v333_v2, 0.0004427343 }
  0x5c   : > { %v833_v40 = vpop.eup %832  ;;  %v332_v25 = vmul.f32 %v1188_v33, %v331_v11 }
  0x5d   : > { %v835_v44 = vpop.eup %834  ;;  %v302_v50 = vmul.f32 0.6931472, %v833_v40 }
  0x5e   : > { %v837_v53 = vpop.eup %836  ;;  %v311_v54 = vmul.f32 0.6931472, %v835_v44 }
  0x5f   : > { %v308_v61 = vsel %vm1198_vm10, %v305_v51, %v302_v50  ;;  %v320_v62 = vmul.f32 0.6931472, %v837_v53  ;;  %v600_v51 = vlaneseq }
  0x60   : > { %v317_v9 = vsel %vm1203_vm11, %v314_v55, %v311_v54  ;;  %v336_v20 = vadd.f32 %v308_v61, %v280_v59 }
  0x61   : > { %v337_v21 = vadd.f32 %v317_v9, %v281_v60  ;;  %v326_v23 = vsel %vm1215_vm12, %v323_v10, %v320_v62  ;;  %v601_v52 = vshrl.u32 %v600_v51, 7 }
  0x62   : > { %v338_v30 = vadd.f32 %v326_v23, %v282_v18 }
  0x63   : > { %v365_v31 = vadd.f32 %v337_v21, %v336_v20  ;;  %vm602_vm3 = vcmp.eq.s32.totalorder %v601_v52, 0 }
  0xc0   : > { %v1186_v27 = vpop.xlane.xlu0 %482 }
  0xc1   : > { %v563_v3 = vmul.f32 %v562_v17, %v1186_v27 }
  0xc8   : > { %v560_v34 = vpop.xlane.xlu0 %559 }
  0xc9   : > { %v561_v36 = vsub.f32 %v560_v34, %v1186_v27 }
  0xcb   : > { %838 = vrcp.f32 %v561_v36  ;;  %v575_v12 = vand.u32 2147483648, %v561_v36  ;;  %v573_v15 = vand.u32 2147483647, %v561_v36  ;;  %vm569_vm14 = vweird.f32 %v561_v36 }
  0xcc   : > { %840 = vlog2.f32 %v327_v37 }
  0xcd   : > { %v576_v26 = vor.u32 1.1754944e-38, %v575_v12  ;;  %vm574_vm1 = vcmp.eq.f32.partialorder %v573_v15, 8.507059e+37 }
  0xd1   : > { %v839_v43 = vpop.eup %838 }
  0xd2   : > { %v565_v4 = vmul.f32 %v839_v43, %v561_v36  ;;  %v841_v63 = vpop.eup %840  ;;  %vm570_vm13 = vweird.f32 %v839_v43  ;;  %v366_v36 = vadd.f32 %v365_v31, %v338_v30 }
  0xd3   : > { %v329_v19 = vmul.f32 0.6931472, %v841_v63  ;;  %vm571_vm15 = vmor %vm569_vm14, %vm570_vm13 }
  0xd4   : > { %v566_v8 = vsub.f32 1.0, %v565_v4 }
  0xd5   : > { %v335_v24 = vsel %vm334_vm0, %v332_v25, %v329_v19 }
  0xd6   : > { %v567_v6 = vmul.f32 %v839_v43, %v566_v8  ;;  %v339_v35 = vadd.f32 %v335_v24, %v283_v29 }
  0xd8   : > { %v568_v22 = vadd.f32 %v839_v43, %v567_v6  ;;  %v367_v37 = vadd.f32 %v366_v36, %v339_v35 }
  0xda   : > { %v572_v7 = vsel %vm571_vm15, %v839_v43, %v568_v22 }
  0xdb   : > { %v577_v28 = vsel %vm574_vm1, %v576_v26, %v572_v7 }
  0xdc   : > { %v578_v32 = vmul.f32 %v577_v28, %v563_v3 }
  0xde   : > { %v580_v34 = vsel %vm579_vm2, %v578_v32, 0.0 }
  0xdf   : > { %581 = vadd.xlane.f32.xlu1 %v580_v34 }
  0xe7   : > { %591 = vadd.xlane.f32.xlu1 %v367_v37 }
 0x152   : > { %v582_v33 = vpop.xlane.xlu1 %581 }
 0x153   : > { %v583_v38 = vrot.slane %v582_v33, 4 }
 0x155   : > { %v584_v39 = vadd.f32 %v583_v38, %v582_v33 }
 0x157   : > { %v585_v27 = vrot.slane %v584_v39, 2 }
 0x159   : > { %v586_v40 = vadd.f32 %v585_v27, %v584_v39 }
 0x15a   : > { %v592_v41 = vpop.xlane.xlu1 %591 }
 0x15b   : > { %v593_v42 = vrot.slane %v592_v41, 4  ;;  %v587_v44 = vrot.slane %v586_v40, 1 }
 0x15d   : > { %v594_v45 = vadd.f32 %v593_v42, %v592_v41  ;;  %v588_v46 = vadd.f32 %v587_v44, %v586_v40 }
 0x15f   : > { %v595_v47 = vrot.slane %v594_v45, 2  ;;  %748 = vpush %v588_v46 }
 0x161   : > { %v596_v48 = vadd.f32 %v595_v47, %v594_v45 }
 0x163   : > { %v597_v49 = vrot.slane %v596_v48, 1 }
 0x165   : > { %v598_v50 = vadd.f32 %v597_v49, %v596_v48 }
 0x167   : > { %750 = vpush %v598_v50 }
 0x190   : > { %s749_s22 = spop %748 }
 0x191   : > { %v604_v53 = vstv %s749_s22 }
 0x198   : > { %s751_s7 = spop %750 }
 0x199   : > { %v603_v54 = vstv %s751_s7 }
 0x19a   : > { %v605_v55 = vsel %vm602_vm3, %v603_v54, %v604_v53 }
 0x19b   : > { %606 = vst [vmem:[%s250_s4] sm:$0x3] %v605_v55 }
 0x19c   : > { %929 = shalt.err (!%p926_p13)
}
 0x19d   : > { %756 = dma.vmem_to_hbm [thread:$0]  (%p1066_p9), %s621_s5, 32, %s623_s6, %s608_s8  }
 0x19e PF: > { %s634_s1 = sand.u32 1, %s968_s12   ;;  %p766_p0 = pnand %p731_p12, %p1073_p11 }
 0x19f   : > { %s635_s10 = scalar_lea.sflag [#allocation7], %s634_s1 }
 0x1a0   : > { %p767_p1 = pneg %p766_p0 }
 0x1a2   : > { %963 = dma.done.wait (%p767_p1), %s635_s10, 32  }
 0x1a3   : > { %965 = vsyncadd (%p767_p1), %s635_s10, 4294967264  ;;  %s22_s17 = sadd.s32 1, %s988_s17   ;;  %s1285_s12 = smov %s972_s13 }
 0x1a4   : > { %p19_p2 = scmp.ge.s32.totalorder %s22_s17, 4   ;;  %s1286_s13 = smov %s976_s14 }
 0x1a5   : > { %s1287_s14 = smov %s1071_s26  ;;  %s1288_s15 = smov %s984_s16 }
 0x1a6   : > { %s1289_s16 = smov %s1291_s20  ;;  %21 = sbr.rel (!%p19_p2) target bundleno = 10 (0xa), region = 98 }
 0x1ab   :  { %641 = vsyncpa [#allocation6], 1 }
 0x1ac   :  { %643 = vsyncpa [#allocation6 + $0x1], 1 }
 0x1ad   :  { %644 = vsyncpa [#allocation9], 1 }
 0x1ae   :  { %646 = vsyncpa [#allocation9 + $0x1], 1 }
 0x1af   :  { %647 = vsyncpa [#allocation7], 1 }
 0x1b0   :  { %649 = vsyncpa [#allocation7 + $0x1], 1 }

</bundles_post_ra>
